<compile_context>
chip_gen: v5e
topology: v5e:2x2
jax: 0.10.0
libtpu: 0.0.40
codegen_flags: <defaults>
</compile_context>

<pallas_src>
import jax
import jax.numpy as jnp
from jax.experimental import pallas as pl
from jax.experimental.pallas import tpu as pltpu


def critic_kernel(x_ref, w1_ref, b1_ref, w2_ref, b2_ref, w3_ref, b3_ref, out_ref):
    """Fused MLP critic: tanh(x@W1+b1) -> tanh(.@W2+b2) -> sum(.*w3_row) + b3."""
    x = x_ref[...]
    h1 = jnp.tanh(
        jnp.dot(x, w1_ref[...], preferred_element_type=jnp.float32) + b1_ref[...]
    )
    h2 = jnp.tanh(
        jnp.dot(h1, w2_ref[...], preferred_element_type=jnp.float32) + b2_ref[...]
    )
    # Final projection F2 -> 1: elementwise multiply (VPU) + lane reduction
    # (XLU) instead of a (tile_b,128)@(128,1) MXU matmul with a single useful
    # output column.
    v = jnp.sum(h2 * w3_ref[...], axis=-1, keepdims=True)
    out_ref[...] = v + b3_ref[...]


def _pick_tile_b(B):
    """Batch tile: one block for small batches, MXU-aligned tiles otherwise.

    Large tiles fill the MXU M dimension and amortize the ~0.35us per-grid-step
    pipeline overhead; multi-step grids (B >= 2*tile_b) let v7x's two
    TensorCores share the 'parallel' axis.  Always returns a divisor of B.
    """
    if B <= 256:
        return B
    for t in (256, 128):
        if B % t == 0:
            return t
    return B  # odd batch size: one big block (still tiny vs. VMEM)


def critic_forward(state, params, *, tile_b=None):
    """Run the fused critic MLP over the batch with a Pallas TPU kernel.

    state : (B, input_dims) float32
    params: dict with
        w1 (D, F1), b1 (1, F1)     -- fc1, weight stored transposed vs. PyTorch
        w2 (F1, F2), b2 (1, F2)    -- fc2, weight stored transposed vs. PyTorch
        w3 (1, F2),  b3 (1, 1)     -- value head, PyTorch-native (out,in) layout
    returns (B, 1) float32 value estimate.
    """
    B, D = state.shape
    F1 = params["w1"].shape[1]
    F2 = params["w2"].shape[1]
    if tile_b is None:
        tile_b = _pick_tile_b(B)
    assert B % tile_b == 0, "tile_b must divide the batch"

    grid = (B // tile_b,)

    flops = 2 * B * (D * F1 + F1 * F2 + F2)
    transcendentals = B * (F1 + F2)
    bytes_accessed = 4 * (
        B * D + B                       # state in, value out
        + D * F1 + F1 + F1 * F2 + F2    # w1, b1, w2, b2
        + F2 + 1                        # w3, b3
    )

    return pl.pallas_call(
        critic_kernel,
        out_shape=jax.ShapeDtypeStruct((B, 1), jnp.float32),
        grid_spec=pltpu.PrefetchScalarGridSpec(
            num_scalar_prefetch=0,
            grid=grid,
            in_specs=[
                # batch tile of the state
                pl.BlockSpec((tile_b, D), lambda i: (i, 0)),
                # weights / biases: full arrays, same block every grid step
                pl.BlockSpec((D, F1), lambda i: (0, 0)),
                pl.BlockSpec((1, F1), lambda i: (0, 0)),
                pl.BlockSpec((F1, F2), lambda i: (0, 0)),
                pl.BlockSpec((1, F2), lambda i: (0, 0)),
                pl.BlockSpec((1, F2), lambda i: (0, 0)),   # w3 row
                pl.BlockSpec((1, 1), lambda i: (0, 0)),
            ],
            out_specs=pl.BlockSpec((tile_b, 1), lambda i: (i, 0)),
        ),
        compiler_params=pltpu.CompilerParams(
            dimension_semantics=("parallel",),
        ),
        cost_estimate=pl.CostEstimate(
            flops=flops,
            transcendentals=transcendentals,
            bytes_accessed=bytes_accessed,
        ),
    )(state, params["w1"], params["b1"], params["w2"], params["b2"],
      params["w3"], params["b3"])


def init_params(key, input_dims, fc1_dims=128, fc2_dims=128):
    """Deterministic init mirroring nn.Linear's U(-1/sqrt(fan_in), 1/sqrt(fan_in)).

    fc1/fc2 weights are stored transposed (in, out) for direct x@W on the MXU;
    the value head weight is stored in PyTorch's native (1, fc2_dims) layout.
    """
    ks = jax.random.split(key, 6)

    def linear(kw, kb, fan_in, fan_out, transpose_w):
        bound = 1.0 / jnp.sqrt(fan_in)
        w_shape = (fan_in, fan_out) if transpose_w else (fan_out, fan_in)
        w = jax.random.uniform(kw, w_shape, jnp.float32, -bound, bound)
        b = jax.random.uniform(kb, (1, fan_out), jnp.float32, -bound, bound)
        return w, b

    w1, b1 = linear(ks[0], ks[1], input_dims, fc1_dims, transpose_w=True)
    w2, b2 = linear(ks[2], ks[3], fc1_dims, fc2_dims, transpose_w=True)
    w3, b3 = linear(ks[4], ks[5], fc2_dims, 1, transpose_w=False)   # (1, fc2_dims)
    return {"w1": w1, "b1": b1, "w2": w2, "b2": b2, "w3": w3, "b3": b3}


def critic_reference(state, p):
    """Pure-JAX reference matching the PyTorch forward."""
    h1 = jnp.tanh(state @ p["w1"] + p["b1"])
    h2 = jnp.tanh(h1 @ p["w2"] + p["b2"])
    return h2 @ p["w3"].T + p["b3"]


# TODO(synk): optimizer (Adam), device placement and checkpoint save/load are
# host-side concerns with no Pallas equivalent; only the forward pass is ported.


if __name__ == "__main__":
    key = jax.random.PRNGKey(0)
    k_param, k_state, k_state2 = jax.random.split(key, 3)

    input_dims = 32  # observation dimension
    params = init_params(k_param, input_dims, fc1_dims=128, fc2_dims=128)

    # Small demo batch: single grid step, whole batch as one block.
    B = 8
    state = jax.random.normal(k_state, (B, input_dims), dtype=jnp.float32)
    value = jax.block_until_ready(critic_forward(state, params))
    ref = critic_reference(state, params)
    assert value.shape == (B, 1)
    assert jnp.allclose(value, ref, atol=1e-4, rtol=1e-4), "mismatch vs reference (B=8)"

    # Larger batch exercising the 256-row MXU-aligned tiling (2 parallel grid
    # steps -> both v7x TensorCores get work).
    B2 = 512
    state2 = jax.random.normal(k_state2, (B2, input_dims), dtype=jnp.float32)
    value2 = jax.block_until_ready(critic_forward(state2, params))
    ref2 = critic_reference(state2, params)
    assert value2.shape == (B2, 1)
    assert jnp.allclose(value2, ref2, atol=1e-4, rtol=1e-4), "mismatch vs reference (B=512)"

    print("KERNEL_OK")
</pallas_src>

<mosaic_0001>
module attributes {stable_mosaic.version = 11 : i64} {
  func.func @critic_kernel(%arg0: i32, %arg1: memref<8x32xf32, #tpu.memory_space<vmem>>, %arg2: memref<32x128xf32, #tpu.memory_space<vmem>>, %arg3: memref<1x128xf32, #tpu.memory_space<vmem>>, %arg4: memref<128x128xf32, #tpu.memory_space<vmem>>, %arg5: memref<1x128xf32, #tpu.memory_space<vmem>>, %arg6: memref<1x128xf32, #tpu.memory_space<vmem>>, %arg7: memref<1x1xf32, #tpu.memory_space<vmem>>, %arg8: memref<8x1xf32, #tpu.memory_space<vmem>>) attributes {dimension_semantics = [#tpu.dimension_semantics<parallel>], iteration_bounds = array<i64: 1>, scalar_prefetch = 0 : i64, scratch_operands = 0 : i64, tpu.core_type = #tpu.core_type<tc>, window_params = [{transform_indices = @transform_0, window_bounds = array<i64: 8, 32>}, {pipeline_mode = #tpu.pipeline_mode<synchronous>, transform_indices = @transform_1, window_bounds = array<i64: 32, 128>}, {pipeline_mode = #tpu.pipeline_mode<synchronous>, transform_indices = @transform_2, window_bounds = array<i64: 1, 128>}, {pipeline_mode = #tpu.pipeline_mode<synchronous>, transform_indices = @transform_3, window_bounds = array<i64: 128, 128>}, {pipeline_mode = #tpu.pipeline_mode<synchronous>, transform_indices = @transform_4, window_bounds = array<i64: 1, 128>}, {pipeline_mode = #tpu.pipeline_mode<synchronous>, transform_indices = @transform_5, window_bounds = array<i64: 1, 128>}, {pipeline_mode = #tpu.pipeline_mode<synchronous>, transform_indices = @transform_6, window_bounds = array<i64: 1, 1>}, {transform_indices = @transform_7, window_bounds = array<i64: 8, 1>}]} {
    %c0 = arith.constant 0 : index
    %c0_0 = arith.constant 0 : index
    %0 = vector.load %arg1[%c0, %c0_0] : memref<8x32xf32, #tpu.memory_space<vmem>>, vector<8x32xf32>
    %c0_1 = arith.constant 0 : index
    %c0_2 = arith.constant 0 : index
    %1 = vector.load %arg2[%c0_1, %c0_2] : memref<32x128xf32, #tpu.memory_space<vmem>>, vector<32x128xf32>
    %cst = arith.constant dense<0.000000e+00> : vector<8x128xf32>
    %2 = tpu.matmul %0, %1, %cst {dimension_numbers = #tpu.dot_dimension_numbers<[1], [0], [0], [1], [0, 0, 1, 1], [], []>} : vector<8x32xf32>, vector<32x128xf32>, vector<8x128xf32> -> vector<8x128xf32>
    %c0_3 = arith.constant 0 : index
    %c0_4 = arith.constant 0 : index
    %3 = vector.load %arg3[%c0_3, %c0_4] : memref<1x128xf32, #tpu.memory_space<vmem>>, vector<1x128xf32>
    %4 = vector.broadcast %3 : vector<1x128xf32> to vector<8x128xf32>
    %5 = arith.addf %2, %4 : vector<8x128xf32>
    %6 = math.tanh %5 : vector<8x128xf32>
    %c0_5 = arith.constant 0 : index
    %c0_6 = arith.constant 0 : index
    %7 = vector.load %arg4[%c0_5, %c0_6] : memref<128x128xf32, #tpu.memory_space<vmem>>, vector<128x128xf32>
    %cst_7 = arith.constant dense<0.000000e+00> : vector<8x128xf32>
    %8 = tpu.matmul %6, %7, %cst_7 {dimension_numbers = #tpu.dot_dimension_numbers<[1], [0], [0], [1], [0, 0, 1, 1], [], []>} : vector<8x128xf32>, vector<128x128xf32>, vector<8x128xf32> -> vector<8x128xf32>
    %c0_8 = arith.constant 0 : index
    %c0_9 = arith.constant 0 : index
    %9 = vector.load %arg5[%c0_8, %c0_9] : memref<1x128xf32, #tpu.memory_space<vmem>>, vector<1x128xf32>
    %10 = vector.broadcast %9 : vector<1x128xf32> to vector<8x128xf32>
    %11 = arith.addf %8, %10 : vector<8x128xf32>
    %12 = math.tanh %11 : vector<8x128xf32>
    %c0_10 = arith.constant 0 : index
    %c0_11 = arith.constant 0 : index
    %13 = vector.load %arg6[%c0_10, %c0_11] : memref<1x128xf32, #tpu.memory_space<vmem>>, vector<1x128xf32>
    %14 = vector.broadcast %13 : vector<1x128xf32> to vector<8x128xf32>
    %15 = arith.mulf %12, %14 : vector<8x128xf32>
    %cst_12 = arith.constant dense<0.000000e+00> : vector<8xf32>
    %16 = vector.multi_reduction <add>, %15, %cst_12 [1] : vector<8x128xf32> to vector<8xf32>
    %17 = vector.shape_cast %16 : vector<8xf32> to vector<8x1xf32>
    %c0_13 = arith.constant 0 : index
    %c0_14 = arith.constant 0 : index
    %18 = vector.load %arg7[%c0_13, %c0_14] : memref<1x1xf32, #tpu.memory_space<vmem>>, vector<1x1xf32>
    %19 = vector.broadcast %18 : vector<1x1xf32> to vector<8x1xf32>
    %20 = arith.addf %17, %19 : vector<8x1xf32>
    %c0_15 = arith.constant 0 : index
    %c0_16 = arith.constant 0 : index
    %21 = vector.load %arg8[%c0_15, %c0_16] : memref<8x1xf32, #tpu.memory_space<vmem>>, vector<8x1xf32>
    tpu.vector_store %arg8[%c0_15, %c0_16], %20 {strides = array<i32>} : memref<8x1xf32, #tpu.memory_space<vmem>>, vector<8x1xf32>,
    return
  }
  func.func @transform_0(%arg0: i32) -> (i32, i32) {
    %c0_i32 = arith.constant 0 : i32
    %c0_i32_0 = arith.constant 0 : i32
    return %arg0, %c0_i32 : i32, i32
  }
  func.func @transform_1(%arg0: i32) -> (i32, i32) {
    %c0_i32 = arith.constant 0 : i32
    %c0_i32_0 = arith.constant 0 : i32
    %c0_i32_1 = arith.constant 0 : i32
    return %c0_i32, %c0_i32_0 : i32, i32
  }
  func.func @transform_2(%arg0: i32) -> (i32, i32) {
    %c0_i32 = arith.constant 0 : i32
    %c0_i32_0 = arith.constant 0 : i32
    %c0_i32_1 = arith.constant 0 : i32
    return %c0_i32, %c0_i32_0 : i32, i32
  }
  func.func @transform_3(%arg0: i32) -> (i32, i32) {
    %c0_i32 = arith.constant 0 : i32
    %c0_i32_0 = arith.constant 0 : i32
    %c0_i32_1 = arith.constant 0 : i32
    return %c0_i32, %c0_i32_0 : i32, i32
  }
  func.func @transform_4(%arg0: i32) -> (i32, i32) {
    %c0_i32 = arith.constant 0 : i32
    %c0_i32_0 = arith.constant 0 : i32
    %c0_i32_1 = arith.constant 0 : i32
    return %c0_i32, %c0_i32_0 : i32, i32
  }
  func.func @transform_5(%arg0: i32) -> (i32, i32) {
    %c0_i32 = arith.constant 0 : i32
    %c0_i32_0 = arith.constant 0 : i32
    %c0_i32_1 = arith.constant 0 : i32
    return %c0_i32, %c0_i32_0 : i32, i32
  }
  func.func @transform_6(%arg0: i32) -> (i32, i32) {
    %c0_i32 = arith.constant 0 : i32
    %c0_i32_0 = arith.constant 0 : i32
    %c0_i32_1 = arith.constant 0 : i32
    return %c0_i32, %c0_i32_0 : i32, i32
  }
  func.func @transform_7(%arg0: i32) -> (i32, i32) {
    %c0_i32 = arith.constant 0 : i32
    %c0_i32_0 = arith.constant 0 : i32
    return %arg0, %c0_i32 : i32, i32
  }
}

</mosaic_0001>

<bundles_post_ra>
// kernel: tpu_custom_call.1
= control target key start
LH: loop header
LB: loop body
LE: loop exit
PB: predicated region body
PF: predicated region fallthrough
CT: control target
= control target key end

     0   :  { %s327_s0 = inlined_call_operand.hbm [shape: f32[8,32], index: 0, kind: input, shape index: {}]   ;;  %s328_s1 = inlined_call_operand.hbm [shape: f32[32,128], index: 1, kind: input, shape index: {}]   ;;  %s329_s2 = inlined_call_operand.vmem [shape: f32[1,128], index: 2, kind: input, shape index: {}]   ;;  %s330_s3 = inlined_call_operand.hbm [shape: f32[128,128], index: 3, kind: input, shape index: {}]   ;;  %s331_s4 = inlined_call_operand.vmem [shape: f32[1,128], index: 4, kind: input, shape index: {}]   ;;  %s332_s5 = inlined_call_operand.vmem [shape: f32[1,128], index: 5, kind: input, shape index: {}]   ;;  %s333_s6 = inlined_call_operand.<no memory space> [shape: f32[1,1], index: 6, kind: input, shape index: {}]   ;;  %s334_s7 = inlined_call_operand.vmem [shape: f32[8,1], index: 7, kind: output, shape index: {}]  }
   0x1   :  { %v12_v0 = vstv %s333_s6 }
   0x2   :  { %13 = vst [vmem:[#allocation2] sm:$0x1] %v12_v0 }
   0x3   :  { %14 = vsyncpa [#allocation4], 0 }
   0x4   :  { %15 = vsyncpa [#allocation6], 0  ;;  %s31_s28 = sshll.u32 %s328_s1, 4  ;;  %s258_s29 = smov [#allocation5]   ;;  %s32_s28 = int_to_ptr.hbm [resolvable:$true] %s31_s28 }
   0x5   :  { %s33_s30 = sshll.u32 %s258_s29, 4  ;;  %s21_s10 = sshll.u32 %s327_s0, 4  ;;  %s34_s30 = int_to_ptr.vmem [resolvable:$true] %s33_s30  ;;  %s22_s10 = int_to_ptr.hbm [resolvable:$true] %s21_s10 }
   0x6   :  { %s259_s11 = smov 128   ;;  %s260_s12 = smov 8  }
   0x7   :  { %39 = dma.hbm_to_vmem [thread:$0]  %s32_s28, 512, %s34_s30, [#allocation6], %s259_s11, %s259_s11, %s260_s12  }
   0x8   :  { %s261_s6 = smov [#allocation3]   ;;  %s46_s16 = sshll.u32 %s330_s3, 4  ;;  %s47_s16 = int_to_ptr.hbm [resolvable:$true] %s46_s16 }
   0x9   :  { %s23_s13 = sshll.u32 %s261_s6, 4  ;;  %s262_s1 = smov [#allocation7]   ;;  %s24_s13 = int_to_ptr.vmem [resolvable:$true] %s23_s13 }
   0xa   :  { %26 = dma.hbm_to_vmem [thread:$0]  %s22_s10, 128, %s24_s13, [#allocation4]  }
   0xb   :  { %s48_s17 = sshll.u32 %s262_s1, 4  ;;  %s49_s17 = int_to_ptr.vmem [resolvable:$true] %s48_s17 }
   0xc   :  { %54 = dma.hbm_to_vmem [thread:$0]  %s47_s16, 2048, %s49_s17, [#allocation6], %s259_s11, %s259_s11, %s260_s12  }
   0xd   :  { %254 = dma.done.wait [#allocation4], 128  }
   0xe   :  { %255 = vsyncadd [#allocation4], 4294967168 }
   0xf   :  { %256 = dma.done.wait [#allocation6], 2560  }
  0x10   :  { %257 = vsyncadd [#allocation6], 4294964736  ;;  %v77_v1 = vld [vmem:[#allocation5 + $0x18] sm:$0xff]  ;;  %v76_v2 = vld [vmem:[#allocation5 + $0x10] sm:$0xff]  ;;  %vm82_vm0 = vcmask 261120   ;;  %vm160_vm1 = vcmask 7168  }
  0x11   :  { %98 = vmatpush.msra.mxu0 %v77_v1  ;;  %v122_v3 = vld [vmem:[#allocation7 + $0x78] sm:$0xff]  ;;  %v75_v4 = vld [vmem:[#allocation5 + $0x8] sm:$0xff]  ;;  %v121_v5 = vld [vmem:[#allocation7 + $0x70] sm:$0xff] }
  0x12   :  { %127 = vmatpush.msra.mxu1 %v122_v3  ;;  %v120_v6 = vld [vmem:[#allocation7 + $0x68] sm:$0xff]  ;;  %v74_v7 = vld [vmem:[#allocation5] sm:$0xff]  ;;  %v73_v8 = vld [vmem:[#allocation3] sm:$0xff] }
  0x13   :  { %99 = vmatpush.msra.mxu0 %v76_v2  ;;  %v119_v9 = vld [vmem:[#allocation7 + $0x60] sm:$0xff]  ;;  %v118_v10 = vld [vmem:[#allocation7 + $0x58] sm:$0xff]  ;;  %v117_v11 = vld [vmem:[#allocation7 + $0x50] sm:$0xff] }
  0x14   :  { %128 = vmatpush.msra.mxu1 %v121_v5  ;;  %v116_v12 = vld [vmem:[#allocation7 + $0x48] sm:$0xff]  ;;  %v115_v13 = vld [vmem:[#allocation7 + $0x40] sm:$0xff]  ;;  %v114_v14 = vld [vmem:[#allocation7 + $0x38] sm:$0xff] }
  0x15   :  { %100 = vmatpush.msra.mxu0 %v75_v4  ;;  %v113_v15 = vld [vmem:[#allocation7 + $0x30] sm:$0xff]  ;;  %v112_v16 = vld [vmem:[#allocation7 + $0x28] sm:$0xff]  ;;  %v111_v17 = vld [vmem:[#allocation7 + $0x20] sm:$0xff] }
  0x16   :  { %129 = vmatpush.msra.mxu1 %v120_v6  ;;  %v110_v18 = vld [vmem:[#allocation7 + $0x18] sm:$0xff]  ;;  %v109_v19 = vld [vmem:[#allocation7 + $0x10] sm:$0xff]  ;;  %v108_v20 = vld [vmem:[#allocation7 + $0x8] sm:$0xff] }
  0x17   :  { %101 = vmatpush.msra.mxu0 %v74_v7  ;;  %v107_v21 = vld [vmem:[#allocation7] sm:$0xff]  ;;  %v174_v22 = vld [vmem:[%s329_s2] ss:$0 sm:$0xff] }
  0x18   :  { %168 = vmatmul.msk.f32.vlgmr.msra.gmra.mxu0 %vm82_vm0, %v73_v8  ;;  %130 = vmatpush.msra.mxu1 %v119_v9  ;;  %v175_v26 = vld [vmem:[%s331_s4] ss:$0 sm:$0xff] }
  0x19   :  { %v176_v29 = vld [vmem:[%s332_s5] ss:$0 sm:$0xff] }
  0x1a   :  { %131 = vmatpush.msra.mxu1 %v118_v10  ;;  %v177_v32 = vld [vmem:[#allocation2] ss:$0 sm:$0xff] }
  0x1c   :  { %132 = vmatpush.msra.mxu1 %v117_v11 }
  0x1e   :  { %133 = vmatpush.msra.mxu1 %v116_v12 }
  0x20   :  { %134 = vmatpush.msra.mxu1 %v115_v13 }
  0x22   :  { %135 = vmatpush.msra.mxu1 %v114_v14 }
  0x24   :  { %136 = vmatpush.msra.mxu1 %v113_v15 }
  0x26   :  { %137 = vmatpush.msra.mxu1 %v112_v16 }
  0x28   :  { %138 = vmatpush.msra.mxu1 %v111_v17 }
  0x2a   :  { %139 = vmatpush.msra.mxu1 %v110_v18 }
  0x2c   :  { %140 = vmatpush.msra.mxu1 %v109_v19 }
  0x2e   :  { %141 = vmatpush.msra.mxu1 %v108_v20 }
  0x30   :  { %142 = vmatpush.msra.mxu1 %v107_v21 }
  0x95   :  { %v103_v23 = vpop.f32.mrf.mxu0 }
  0x96   :  { %v104_v24 = vadd.f32 %v174_v22, %v103_v23 }
  0x98   :  { %178 = vtanh.f32 %v104_v24 }
  0x9e   :  { %v179_v25 = vpop.eup %178 }
  0x9f   :  { %143 = vmatmul.f32.vlgmr.msra.gmra.mxu1 %v179_v25 }
 0x11c   :  { %v144_v27 = vpop.f32.mrf.mxu1 }
 0x11d   :  { %v145_v28 = vadd.f32 %v175_v26, %v144_v27 }
 0x11f   :  { %180 = vtanh.f32 %v145_v28 }
 0x125   :  { %v181_v30 = vpop.eup %180 }
 0x126   :  { %v152_v31 = vmul.f32 %v181_v30, %v176_v29 }
 0x128   :  { %153 = vadd.xlane.f32.xlu0 %v152_v31 }
 0x19b   :  { %v154_v33 = vpop.xlane.xlu0 %153 }
 0x19c   :  { %v159_v34 = vadd.f32 %v177_v32, %v154_v33 }
 0x19e   :  { %161 = vst.msk [vmem:[%s334_s7] sm:$0xff] %vm160_vm1, %v159_v34 }
 0x19f   :  { %166 = vsyncpa [#allocation4], 1 }
 0x1a0   :  { %167 = vsyncpa [#allocation6], 1 }

</bundles_post_ra>
